<compile_context>
chip_gen: v6e
topology: v6e:2x2x1
jax: 0.10.0
libtpu: 0.0.40
codegen_flags: <defaults>
</compile_context>

<pallas_src>
import functools
import math

import jax
import jax.numpy as jnp
from jax.experimental import pallas as pl
from jax.experimental.pallas import tpu as pltpu


def _round_up(x, m):
    return ((x + m - 1) // m) * m


def _pick_row_tile(m8, max_rows):
    """Largest divisor of m8 (a multiple of 8) that is <= max_rows,
    preferring 256-, then 128-, then 8-aligned tiles (MXU-friendly)."""
    max_rows = max(8, min(max_rows, m8))
    for align in (256, 128, 8):
        best = 0
        d = align
        while d <= max_rows:
            if m8 % d == 0:
                best = d
            d += align
        if best:
            return best
    return 8


def _gating_kernel(w1_ref, w2_ref, b_ref, x_ref, h_ref, o_ref, *, tn):
    x = x_ref[...]                                    # (TM, H) f32
    h = h_ref[...]                                    # (TM, H) f32

    # bf16 operands drive the MXU at native rate on v5e/v6e/v7x; accumulate
    # in f32. Weights arrive pre-transposed -> plain (M,H) @ (H,TN), no
    # per-step transpose / XLU work.
    gated = jnp.dot(x.astype(jnp.bfloat16), w1_ref[...],
                    preferred_element_type=jnp.float32)
    gated = gated + jnp.dot(h.astype(jnp.bfloat16), w2_ref[...],
                            preferred_element_type=jnp.float32)
    gated = gated + b_ref[...]                        # (1, TN) broadcasts over rows

    gate = jax.nn.sigmoid(gated)                      # EUP path, f32

    if tn == x_ref.shape[-1]:
        xs, hs = x, h
    else:
        # Output-column-tiled case: blend only this tile's columns.
        col = pl.multiple_of(pl.program_id(1) * tn, tn)
        xs = x_ref[:, pl.ds(col, tn)]
        hs = h_ref[:, pl.ds(col, tn)]

    # x*gate + h*(1-gate) == h + gate*(x - h): one fewer full-tile multiply.
    o_ref[...] = (hs + gate * (xs - hs)).astype(o_ref.dtype)


def gating_forward(x, h, w1, w2, bias, *, block_rows=512):
    """x, h: (..., H); w1, w2: (H, H); bias: (H,). Returns same shape as x."""
    out_dtype = x.dtype
    lead_shape = x.shape[:-1]
    H = x.shape[-1]

    x2 = x.reshape(-1, H).astype(jnp.float32)
    h2 = h.reshape(-1, H).astype(jnp.float32)
    # One-time wrapper transpose + bf16 cast of the weights.
    w1c = jnp.asarray(w1).T.astype(jnp.bfloat16)      # (H_in, H_out)
    w2c = jnp.asarray(w2).T.astype(jnp.bfloat16)
    bias2 = jnp.asarray(bias).reshape(1, H).astype(jnp.float32)

    M = x2.shape[0]
    m8 = _round_up(M, 8)
    if m8 != M:  # at most 7 alignment rows; sliced off at the end
        pad = ((0, m8 - M), (0, 0))
        x2 = jnp.pad(x2, pad)
        h2 = jnp.pad(h2, pad)

    # Output-column tiling only for large H (keeps per-step weight blocks
    # bounded on v7x's 64 MiB VMEM); tn stays a multiple of 256.
    if H >= 2048 and H % 512 == 0:
        tn = 512
    else:
        tn = H
    grid_n = H // tn

    # Cap row tile so the double-buffered (x, h, out) tiles stay ~<= 24 MiB.
    vmem_rows_cap = max(8, ((24 << 20) // (8 * (2 * H + tn))) // 8 * 8)
    tm = _pick_row_tile(m8, min(block_rows, vmem_rows_cap))
    grid_m = m8 // tm
    # v7x megacore: guarantee >= 2 parallel grid steps when M allows it.
    if grid_m * grid_n < 2 and m8 > 8:
        tm = _pick_row_tile(m8, m8 // 2)
        grid_m = m8 // tm

    # VMEM budget (upper bound: everything double-buffered) + headroom.
    block_bytes = (2 * H * tn * 2 * 2          # w1, w2 (bf16)
                   + 2 * tm * H * 4 * 2        # x, h (f32)
                   + tm * tn * 4 * 2)          # out (f32)
    vmem_limit = int(min(max(block_bytes * 3 // 2 + (2 << 20), 32 << 20),
                         64 << 20))

    flops = 4 * m8 * H * H + 6 * m8 * H
    transcendentals = m8 * H
    bytes_accessed = (2 * 4 * m8 * H * grid_n   # x, h reads (re-read per j tile)
                      + 4 * m8 * H              # output write
                      + 2 * 2 * H * H           # bf16 weights
                      + 4 * H)                  # bias

    def build_call(single_buffer_consts):
        const_mode = {}
        if single_buffer_consts and grid_n == 1:
            # Grid-invariant inputs: double-buffering only wastes VMEM.
            const_mode = dict(pipeline_mode=pl.Buffered(1))
        in_specs = [
            pl.BlockSpec((H, tn), lambda i, j: (0, j), **const_mode),   # w1.T
            pl.BlockSpec((H, tn), lambda i, j: (0, j), **const_mode),   # w2.T
            pl.BlockSpec((1, tn), lambda i, j: (0, j), **const_mode),   # bias
            pl.BlockSpec((tm, H), lambda i, j: (i, 0)),                 # input rows
            pl.BlockSpec((tm, H), lambda i, j: (i, 0)),                 # hidden rows
        ]
        return pl.pallas_call(
            functools.partial(_gating_kernel, tn=tn),
            out_shape=jax.ShapeDtypeStruct((m8, H), jnp.float32),
            grid_spec=pltpu.PrefetchScalarGridSpec(
                num_scalar_prefetch=0,
                grid=(grid_m, grid_n),
                in_specs=in_specs,
                out_specs=pl.BlockSpec((tm, tn), lambda i, j: (i, j)),
            ),
            compiler_params=pltpu.CompilerParams(
                dimension_semantics=("parallel", "parallel"),
                vmem_limit_bytes=vmem_limit,
            ),
            cost_estimate=pl.CostEstimate(
                flops=flops,
                transcendentals=transcendentals,
                bytes_accessed=bytes_accessed),
        )

    try:
        out = build_call(True)(w1c, w2c, bias2, x2, h2)
    except Exception:
        # pipeline_mode=pl.Buffered(1) unsupported on this jax build -> fall
        # back to default double-buffered constants (same numerics).
        out = build_call(False)(w1c, w2c, bias2, x2, h2)

    if m8 != M:
        out = out[:M]
    return out.reshape(*lead_shape, H).astype(out_dtype)


class GatingMechanismPallas:
    """Forward-only re-implementation of the PyTorch GatingMechanism."""

    def __init__(self, hidden_size, rng_key=None):
        if rng_key is None:
            rng_key = jax.random.PRNGKey(0)
        k1, k2, k3 = jax.random.split(rng_key, 3)
        stdv1 = 1.0 / math.sqrt(hidden_size)
        stdv2 = 1.0 / math.sqrt(hidden_size)
        stdv = (stdv1 + stdv2) / 2.0
        self.hidden_size = hidden_size
        self.w1 = jax.random.uniform(k1, (hidden_size, hidden_size),
                                     jnp.float32, -stdv1, stdv1)
        self.w2 = jax.random.uniform(k2, (hidden_size, hidden_size),
                                     jnp.float32, -stdv2, stdv2)
        self.bias = jax.random.uniform(k3, (hidden_size,),
                                       jnp.float32, -stdv, stdv)

    def __call__(self, input, hidden):
        return gating_forward(input, hidden, self.w1, self.w2, self.bias)


def _reference_forward(x, h, w1, w2, bias):
    gated = x @ w1.T + h @ w2.T + bias
    gate = jax.nn.sigmoid(gated)
    return x * gate + h * (1.0 - gate)


if __name__ == "__main__":
    B, S, H = 2, 8, 128   # H multiple of 128 -> lane-dense blocks

    root = jax.random.PRNGKey(0)
    k_mod, k_x, k_h = jax.random.split(root, 3)

    module = GatingMechanismPallas(H, rng_key=k_mod)

    x = jax.random.normal(k_x, (B, S, H), jnp.float32)
    h = jax.random.normal(k_h, (B, S, H), jnp.float32)

    out = module(x, h)
    out = jax.block_until_ready(out)

    ref = _reference_forward(x, h, module.w1, module.w2, module.bias)
    assert out.shape == (B, S, H)
    # bf16 MXU operands -> loosened tolerance vs the f32 reference.
    assert jnp.allclose(out, ref, atol=3e-2, rtol=3e-2), "mismatch vs reference"

    print("KERNEL_OK")
</pallas_src>

<mosaic_0001>
module attributes {stable_mosaic.version = 11 : i64} {
  func.func @_gating_kernel(%arg0: i32, %arg1: i32, %arg2: memref<128x128xbf16, #tpu.memory_space<vmem>>, %arg3: memref<128x128xbf16, #tpu.memory_space<vmem>>, %arg4: memref<1x128xf32, #tpu.memory_space<vmem>>, %arg5: memref<8x128xf32, #tpu.memory_space<vmem>>, %arg6: memref<8x128xf32, #tpu.memory_space<vmem>>, %arg7: memref<8x128xf32, #tpu.memory_space<vmem>>) attributes {dimension_semantics = [#tpu.dimension_semantics<parallel>, #tpu.dimension_semantics<parallel>], iteration_bounds = array<i64: 2, 1>, scalar_prefetch = 0 : i64, scratch_operands = 0 : i64, tpu.core_type = #tpu.core_type<tc>, window_params = [{pipeline_mode = #tpu.pipeline_mode<synchronous>, transform_indices = @transform_0, window_bounds = array<i64: 128, 128>}, {pipeline_mode = #tpu.pipeline_mode<synchronous>, transform_indices = @transform_1, window_bounds = array<i64: 128, 128>}, {pipeline_mode = #tpu.pipeline_mode<synchronous>, transform_indices = @transform_2, window_bounds = array<i64: 1, 128>}, {transform_indices = @transform_3, window_bounds = array<i64: 8, 128>}, {transform_indices = @transform_4, window_bounds = array<i64: 8, 128>}, {transform_indices = @transform_5, window_bounds = array<i64: 8, 128>}]} {
    %c0 = arith.constant 0 : index
    %c0_0 = arith.constant 0 : index
    %0 = vector.load %arg5[%c0, %c0_0] : memref<8x128xf32, #tpu.memory_space<vmem>>, vector<8x128xf32>
    %c0_1 = arith.constant 0 : index
    %c0_2 = arith.constant 0 : index
    %1 = vector.load %arg6[%c0_1, %c0_2] : memref<8x128xf32, #tpu.memory_space<vmem>>, vector<8x128xf32>
    %2 = arith.truncf %0 : vector<8x128xf32> to vector<8x128xbf16>
    %c0_3 = arith.constant 0 : index
    %c0_4 = arith.constant 0 : index
    %3 = vector.load %arg2[%c0_3, %c0_4] : memref<128x128xbf16, #tpu.memory_space<vmem>>, vector<128x128xbf16>
    %cst = arith.constant dense<0.000000e+00> : vector<8x128xf32>
    %4 = tpu.matmul %2, %3, %cst {dimension_numbers = #tpu.dot_dimension_numbers<[1], [0], [0], [1], [0, 0, 1, 1], [], []>} : vector<8x128xbf16>, vector<128x128xbf16>, vector<8x128xf32> -> vector<8x128xf32>
    %5 = arith.truncf %1 : vector<8x128xf32> to vector<8x128xbf16>
    %c0_5 = arith.constant 0 : index
    %c0_6 = arith.constant 0 : index
    %6 = vector.load %arg3[%c0_5, %c0_6] : memref<128x128xbf16, #tpu.memory_space<vmem>>, vector<128x128xbf16>
    %cst_7 = arith.constant dense<0.000000e+00> : vector<8x128xf32>
    %7 = tpu.matmul %5, %6, %cst_7 {dimension_numbers = #tpu.dot_dimension_numbers<[1], [0], [0], [1], [0, 0, 1, 1], [], []>} : vector<8x128xbf16>, vector<128x128xbf16>, vector<8x128xf32> -> vector<8x128xf32>
    %8 = arith.addf %4, %7 : vector<8x128xf32>
    %c0_8 = arith.constant 0 : index
    %c0_9 = arith.constant 0 : index
    %9 = vector.load %arg4[%c0_8, %c0_9] : memref<1x128xf32, #tpu.memory_space<vmem>>, vector<1x128xf32>
    %10 = vector.broadcast %9 : vector<1x128xf32> to vector<8x128xf32>
    %11 = arith.addf %8, %10 : vector<8x128xf32>
    %12 = arith.negf %11 : vector<8x128xf32>
    %13 = math.exp %12 : vector<8x128xf32>
    %cst_10 = arith.constant 1.000000e+00 : f32
    %14 = vector.broadcast %cst_10 : f32 to vector<8x128xf32>
    %15 = arith.addf %14, %13 : vector<8x128xf32>
    %16 = arith.divf %14, %15 : vector<8x128xf32>
    %17 = arith.subf %0, %1 : vector<8x128xf32>
    %18 = arith.mulf %16, %17 : vector<8x128xf32>
    %19 = arith.addf %1, %18 : vector<8x128xf32>
    %c0_11 = arith.constant 0 : index
    %c0_12 = arith.constant 0 : index
    %20 = vector.load %arg7[%c0_11, %c0_12] : memref<8x128xf32, #tpu.memory_space<vmem>>, vector<8x128xf32>
    tpu.vector_store %arg7[%c0_11, %c0_12], %19 {strides = array<i32>} : memref<8x128xf32, #tpu.memory_space<vmem>>, vector<8x128xf32>,
    return
  }
  func.func @transform_0(%arg0: i32, %arg1: i32) -> (i32, i32) {
    %c0_i32 = arith.constant 0 : i32
    %c0_i32_0 = arith.constant 0 : i32
    return %c0_i32, %arg1 : i32, i32
  }
  func.func @transform_1(%arg0: i32, %arg1: i32) -> (i32, i32) {
    %c0_i32 = arith.constant 0 : i32
    %c0_i32_0 = arith.constant 0 : i32
    return %c0_i32, %arg1 : i32, i32
  }
  func.func @transform_2(%arg0: i32, %arg1: i32) -> (i32, i32) {
    %c0_i32 = arith.constant 0 : i32
    %c0_i32_0 = arith.constant 0 : i32
    return %c0_i32, %arg1 : i32, i32
  }
  func.func @transform_3(%arg0: i32, %arg1: i32) -> (i32, i32) {
    %c0_i32 = arith.constant 0 : i32
    %c0_i32_0 = arith.constant 0 : i32
    return %arg0, %c0_i32 : i32, i32
  }
  func.func @transform_4(%arg0: i32, %arg1: i32) -> (i32, i32) {
    %c0_i32 = arith.constant 0 : i32
    %c0_i32_0 = arith.constant 0 : i32
    return %arg0, %c0_i32 : i32, i32
  }
  func.func @transform_5(%arg0: i32, %arg1: i32) -> (i32, i32) {
    %c0_i32 = arith.constant 0 : i32
    return %arg0, %arg1 : i32, i32
  }
}

module attributes {stable_mosaic.version = 11 : i64} {
  func.func @_gating_kernel(%arg0: i32, %arg1: i32, %arg2: memref<128x128xbf16, #tpu.memory_space<vmem>>, %arg3: memref<128x128xbf16, #tpu.memory_space<vmem>>, %arg4: memref<1x128xf32, #tpu.memory_space<vmem>>, %arg5: memref<8x128xf32, #tpu.memory_space<vmem>>, %arg6: memref<8x128xf32, #tpu.memory_space<vmem>>, %arg7: memref<8x128xf32, #tpu.memory_space<vmem>>) attributes {dimension_semantics = [#tpu.dimension_semantics<parallel>, #tpu.dimension_semantics<parallel>], iteration_bounds = array<i64: 2, 1>, scalar_prefetch = 0 : i64, scratch_operands = 0 : i64, tpu.core_type = #tpu.core_type<tc>, window_params = [{transform_indices = @transform_0, window_bounds = array<i64: 128, 128>}, {transform_indices = @transform_1, window_bounds = array<i64: 128, 128>}, {transform_indices = @transform_2, window_bounds = array<i64: 1, 128>}, {transform_indices = @transform_3, window_bounds = array<i64: 8, 128>}, {transform_indices = @transform_4, window_bounds = array<i64: 8, 128>}, {transform_indices = @transform_5, window_bounds = array<i64: 8, 128>}]} {
    %c0 = arith.constant 0 : index
    %c0_0 = arith.constant 0 : index
    %0 = vector.load %arg5[%c0, %c0_0] : memref<8x128xf32, #tpu.memory_space<vmem>>, vector<8x128xf32>
    %c0_1 = arith.constant 0 : index
    %c0_2 = arith.constant 0 : index
    %1 = vector.load %arg6[%c0_1, %c0_2] : memref<8x128xf32, #tpu.memory_space<vmem>>, vector<8x128xf32>
    %2 = arith.truncf %0 : vector<8x128xf32> to vector<8x128xbf16>
    %c0_3 = arith.constant 0 : index
    %c0_4 = arith.constant 0 : index
    %3 = vector.load %arg2[%c0_3, %c0_4] : memref<128x128xbf16, #tpu.memory_space<vmem>>, vector<128x128xbf16>
    %cst = arith.constant dense<0.000000e+00> : vector<8x128xf32>
    %4 = tpu.matmul %2, %3, %cst {dimension_numbers = #tpu.dot_dimension_numbers<[1], [0], [0], [1], [0, 0, 1, 1], [], []>} : vector<8x128xbf16>, vector<128x128xbf16>, vector<8x128xf32> -> vector<8x128xf32>
    %5 = arith.truncf %1 : vector<8x128xf32> to vector<8x128xbf16>
    %c0_5 = arith.constant 0 : index
    %c0_6 = arith.constant 0 : index
    %6 = vector.load %arg3[%c0_5, %c0_6] : memref<128x128xbf16, #tpu.memory_space<vmem>>, vector<128x128xbf16>
    %cst_7 = arith.constant dense<0.000000e+00> : vector<8x128xf32>
    %7 = tpu.matmul %5, %6, %cst_7 {dimension_numbers = #tpu.dot_dimension_numbers<[1], [0], [0], [1], [0, 0, 1, 1], [], []>} : vector<8x128xbf16>, vector<128x128xbf16>, vector<8x128xf32> -> vector<8x128xf32>
    %8 = arith.addf %4, %7 : vector<8x128xf32>
    %c0_8 = arith.constant 0 : index
    %c0_9 = arith.constant 0 : index
    %9 = vector.load %arg4[%c0_8, %c0_9] : memref<1x128xf32, #tpu.memory_space<vmem>>, vector<1x128xf32>
    %10 = vector.broadcast %9 : vector<1x128xf32> to vector<8x128xf32>
    %11 = arith.addf %8, %10 : vector<8x128xf32>
    %12 = arith.negf %11 : vector<8x128xf32>
    %13 = math.exp %12 : vector<8x128xf32>
    %cst_10 = arith.constant 1.000000e+00 : f32
    %14 = vector.broadcast %cst_10 : f32 to vector<8x128xf32>
    %15 = arith.addf %14, %13 : vector<8x128xf32>
    %16 = arith.divf %14, %15 : vector<8x128xf32>
    %17 = arith.subf %0, %1 : vector<8x128xf32>
    %18 = arith.mulf %16, %17 : vector<8x128xf32>
    %19 = arith.addf %1, %18 : vector<8x128xf32>
    %c0_11 = arith.constant 0 : index
    %c0_12 = arith.constant 0 : index
    %20 = vector.load %arg7[%c0_11, %c0_12] : memref<8x128xf32, #tpu.memory_space<vmem>>, vector<8x128xf32>
    tpu.vector_store %arg7[%c0_11, %c0_12], %19 {strides = array<i32>} : memref<8x128xf32, #tpu.memory_space<vmem>>, vector<8x128xf32>,
    return
  }
  func.func @transform_0(%arg0: i32, %arg1: i32) -> (i32, i32) {
    %c0_i32 = arith.constant 0 : i32
    %c0_i32_0 = arith.constant 0 : i32
    return %c0_i32, %arg1 : i32, i32
  }
  func.func @transform_1(%arg0: i32, %arg1: i32) -> (i32, i32) {
    %c0_i32 = arith.constant 0 : i32
    %c0_i32_0 = arith.constant 0 : i32
    return %c0_i32, %arg1 : i32, i32
  }
  func.func @transform_2(%arg0: i32, %arg1: i32) -> (i32, i32) {
    %c0_i32 = arith.constant 0 : i32
    %c0_i32_0 = arith.constant 0 : i32
    return %c0_i32, %arg1 : i32, i32
  }
  func.func @transform_3(%arg0: i32, %arg1: i32) -> (i32, i32) {
    %c0_i32 = arith.constant 0 : i32
    %c0_i32_0 = arith.constant 0 : i32
    return %arg0, %c0_i32 : i32, i32
  }
  func.func @transform_4(%arg0: i32, %arg1: i32) -> (i32, i32) {
    %c0_i32 = arith.constant 0 : i32
    %c0_i32_0 = arith.constant 0 : i32
    return %arg0, %c0_i32 : i32, i32
  }
  func.func @transform_5(%arg0: i32, %arg1: i32) -> (i32, i32) {
    %c0_i32 = arith.constant 0 : i32
    return %arg0, %arg1 : i32, i32
  }
}

</mosaic_0001>

<bundles_post_ra>
// kernel: tpu_custom_call.1
= control target key start
LH: loop header
LB: loop body
LE: loop exit
PB: predicated region body
PF: predicated region fallthrough
CT: control target
= control target key end

     0   :  { %s1387_s0 = inlined_call_operand.hbm [shape: bf16[128,128], index: 0, kind: input, shape index: {}]   ;;  %s1388_s1 = inlined_call_operand.hbm [shape: bf16[128,128], index: 1, kind: input, shape index: {}]   ;;  %s1389_s2 = inlined_call_operand.vmem [shape: f32[1,128], index: 2, kind: input, shape index: {}]   ;;  %s1390_s3 = inlined_call_operand.hbm [shape: f32[16,128], index: 3, kind: input, shape index: {}]   ;;  %s1391_s4 = inlined_call_operand.hbm [shape: f32[16,128], index: 4, kind: input, shape index: {}]   ;;  %s1392_s5 = inlined_call_operand.hbm [shape: f32[16,128], index: 5, kind: output, shape index: {}]  }
   0x1   :  { %1402 = sst [smem:[#allocation16_spill]] %s1387_s0 }
   0x2   :  { %1403 = sst [smem:[#allocation17_spill]] %s1390_s3 }
   0x3   :  { %10 = vsyncpa [#allocation3], 0 }
   0x4   :  { %11 = vsyncpa [#allocation6], 0 }
   0x5   :  { %12 = vsyncpa [#allocation4], 0 }
   0x6   :  { %14 = vsyncpa [#allocation4 + $0x1], 0  ;;  %s1169_s18 = smov 0   ;;  %s1171_s19 = smov 0  }
   0x7   :  { %s1173_s20 = smov 0   ;;  %s1175_s21 = smov 0  }
   0x8   :  { %s1177_s22 = smov 0   ;;  %s1179_s23 = smov 0  }
   0x9 LB: > { %s1200_s24 = sadd.s32 4294967295, %s1128_s23   ;;  %s724_s25 = sadd.s32 4294967294, %s1128_s23   ;;  %s1128_s23 = sphi %s1179_s23, %s20_s23   ;;  %s1124_s22 = sphi %s1177_s22, %s1435_s22   ;;  %s1120_s21 = sphi %s1175_s21, %s1434_s21   ;;  %s1116_s20 = sphi %s1173_s20, %s1433_s20   ;;  %s1112_s19 = sphi %s1171_s19, %s1432_s19   ;;  %s1108_s18 = sphi %s1169_s18, %s1431_s18  }
   0xa   : > { %p130_p0 = scmp.ne.s32.totalorder %s1112_s19, %s1108_s18  ;;  %p1396_p1 = scmp.eq.s32.totalorder %s1200_s24, 0 }
   0xb   : > { %p188_p3 = scmp.eq.s32.totalorder %s724_s25, 1  ;;  %p725_p5 = scmp.ge.s32.totalorder %s1128_s23, 1 }
   0xc   : > { %p1209_p4 = por %p1396_p1, %p130_p0  ;;  %p195_p7 = scmp.lt.s32.totalorder %s1128_s23, 3 }
   0xd   : > { %p1214_p6 = por %p188_p3, %p130_p0  ;;  %s1130_s29 = smov [#allocation2]  }
   0xe   : > { %s1404_s26 = scalar_select %p1209_p4, 1, 0 }
   0xf   : > { %s1405_s27 = scalar_select %p1214_p6, 1, 0 }
  0x10   : > { %p1219_p8 = pnand %p725_p5, %p195_p7  ;;  %s209_s30 = sshll.u32 %s1130_s29, 4  ;;  %s210_s30 = int_to_ptr.vmem [resolvable:$true] %s209_s30 }
  0x11   : > { %s32_s7 = sadd.s32 1, %s1124_s22  ;;  %s943_s8 = scalar_lea.vmem %s210_s30, 1024 }
  0x12   : > { %s1406_s28 = scalar_select %p1219_p8, 1, 0 }
  0x13   : > { %p834_p9 = pneg %p1219_p8  ;;  %p944_p13 = scmp.ne.s32.totalorder %s210_s30, %s943_s8 }
  0x14   : > { %p951_p5 = scmp.lt.s32.totalorder %s210_s30, %s210_s30  ;;  %p952_p7 = scmp.lt.s32.totalorder %s943_s8, %s943_s8 }
  0x15   : > { %p1228_p11 = pnand %p834_p9, %p1396_p1 }
  0x16   : > { %p953_p2 = por %p952_p7, %p951_p5 }
  0x17   : > { %p1397_p12 = pneg %p1228_p11 }
  0x19   : > { %p946_p0 = pnand %p944_p13, %p1397_p12 }
  0x1b   : > { %p947_p3 = pneg %p946_p0 }
  0x1d   : > { %p954_p10 = pnand %p953_p2, %p947_p3 }
  0x1f   : > { %957 = shalt.err (!%p954_p10)
}
  0x20   : > { %s1393_s9 = smov 64   ;;  %s1394_s10 = smov 4  }
  0x21   : > { %s1408_s0 = sld [smem:[#allocation16_spill]]  ;;  %p34_p2 = scmp.ge.s32.totalorder %s32_s7, 2 }
  0x22   : > { %s117_s13 = sadd.s32 1, %s1116_s20  ;;  %p124_p9 = scmp.ne.s32.totalorder %s1116_s20, %s1112_s19 }
  0x23   : > { %p125_p10 = scmp.eq.s32.totalorder %s1128_s23, 0  ;;  %s1437_s7 = smov (%p34_p2, %s32_s7), 0 }
  0x24   : > { %1409 = sst [smem:[#allocation14_spill]] %s1437_s7  ;;  %p1411_p0 = scmp.eq.s32.totalorder %s1200_s24, 1 }
  0x25   : > { %p1252_p13 = por %p125_p10, %p124_p9  ;;  %s114_s16 = ssub.s32 %s1124_s22, %s1437_s7 }
  0x26   : > { %p1258_p3 = por %p1411_p0, %p124_p9  ;;  %p854_p5 = scmp.lt.s32.totalorder %s1128_s23, 2 }
  0x27   : > { %837 = dma.hbm_to_vmem [thread:$0]  (!%p1228_p11), %s1408_s0, 1024, %s210_s30, [#allocation3], %s1393_s9, %s1393_s9, %s1394_s10  }
  0x28   : > { %s1412_s15 = scalar_select %p1258_p3, 1, 0 }
  0x29   : > { %p115_p7 = scmp.eq.s32.totalorder %s114_s16, 0  ;;  %s244_s17 = sand.u32 1, %s1128_s23  }
  0x2a   : > { %s246_s25 = sand.u32 1, %s1116_s20   ;;  %s731_s8 = sshll.u32 %s1124_s22, 7 }
  0x2b   : > { %s1268_s29 = scalar_select %p115_p7, %s1116_s20, %s117_s13  }
  0x2c   : > { %s1270_s30 = sshll.u32 %s246_s25, 3  ;;  %s1414_s3 = sld [smem:[#allocation17_spill]] }
  0x2d   : > { %1413 = sst [smem:[#allocation15_spill]] %s1268_s29  ;;  %s248_s10 = scalar_lea.vmem [#allocation7], %s1270_s30 }
  0x2e   : > { %s255_s0 = sshll.u32 %s248_s10, 4  ;;  %p1281_p2 = pnand %p854_p5, %p1252_p13  ;;  %s256_s0 = int_to_ptr.vmem [resolvable:$true] %s255_s0 }
  0x2f   : > { %s1133_s13 = smov [#allocation5]   ;;  %s1285_s25 = scalar_lea.sflag [#allocation3], %s244_s17 }
  0x30   : > { %s224_s16 = sshll.u32 %s1133_s13, 4  ;;  %p1398_p9 = pneg %p1281_p2  ;;  %s225_s16 = int_to_ptr.vmem [resolvable:$true] %s224_s16 }
  0x31   : > { %s971_s29 = scalar_lea.vmem %s256_s0, 128  ;;  %s1134_s10 = smov [#allocation7]  }
  0x32   : > { %s253_s9 = scalar_lea.hbm %s1414_s3, %s731_s8  ;;  %p972_p10 = scmp.ne.s32.totalorder %s256_s0, %s971_s29 }
  0x33   : > { %s976_s14 = sshll.u32 %s1134_s10, 4  ;;  %s977_s14 = int_to_ptr.vmem [resolvable:$false] %s976_s14 }
  0x34   : > { %p974_p0 = pnand %p972_p10, %p1398_p9  ;;  %s978_s11 = scalar_lea.vmem %s977_s14, 256 }
  0x35   : > { %p979_p13 = scmp.lt.s32.totalorder %s256_s0, %s977_s14  ;;  %p980_p5 = scmp.lt.s32.totalorder %s978_s11, %s971_s29 }
  0x36   : > { %p975_p7 = pneg %p974_p0 }
  0x37   : > { %p981_p1 = por %p980_p5, %p979_p13 }
  0x39   : > { %p982_p12 = pnand %p981_p1, %p975_p7 }
  0x3b   : > { %985 = shalt.err (!%p982_p12)
}
  0x3c   : > { %844 = dma.hbm_to_vmem [thread:$0]  (!%p1281_p2), %s253_s9, 128, %s256_s0, %s1285_s25  }
  0x3d   : > { %s997_s17 = scalar_lea.vmem %s225_s16, 1024  ;;  %p1416_p10 = pneg %p1228_p11 }
  0x3e   : > { %p998_p6 = scmp.ne.s32.totalorder %s225_s16, %s997_s17  ;;  %p1005_p3 = scmp.lt.s32.totalorder %s225_s16, %s225_s16 }
  0x3f   : > { %p1006_p4 = scmp.lt.s32.totalorder %s997_s17, %s997_s17 }
  0x40   : > { %p1000_p0 = pnand %p998_p6, %p1416_p10 }
  0x41   : > { %p1007_p8 = por %p1006_p4, %p1005_p3 }
  0x42   : > { %p1001_p9 = pneg %p1000_p0 }
  0x44   : > { %p1008_p5 = pnand %p1007_p8, %p1001_p9 }
  0x46   : > { %1011 = shalt.err (!%p1008_p5)
}
  0x47   : > { %s1417_s29 = smov 4   ;;  %s1418_s12 = smov 64  }
  0x48   : > { %840 = dma.hbm_to_vmem [thread:$0]  (!%p1228_p11), %s1388_s1, 1024, %s225_s16, [#allocation6], %s1418_s12, %s1418_s12, %s1417_s29  }
  0x49   : > { %s271_s14 = scalar_lea.hbm %s1391_s4, %s731_s8  ;;  %s266_s11 = scalar_lea.vmem [#allocation8], %s1270_s30 }
  0x4a   : > { %s273_s17 = sshll.u32 %s266_s11, 4  ;;  %p1419_p4 = pneg %p1281_p2  ;;  %s274_s17 = int_to_ptr.vmem [resolvable:$true] %s273_s17 }
  0x4b   : > { %s1025_s3 = scalar_lea.vmem %s274_s17, 128  ;;  %s1135_s6 = smov [#allocation8]  }
  0x4c   : > { %p1026_p1 = scmp.ne.s32.totalorder %s274_s17, %s1025_s3  ;;  %s1030_s13 = sshll.u32 %s1135_s6, 4  ;;  %s1031_s13 = int_to_ptr.vmem [resolvable:$false] %s1030_s13 }
  0x4d   : > { %s1032_s10 = scalar_lea.vmem %s1031_s13, 256  ;;  %p1033_p12 = scmp.lt.s32.totalorder %s274_s17, %s1031_s13 }
  0x4e   : > { %p1028_p6 = pnand %p1026_p1, %p1419_p4  ;;  %p1034_p11 = scmp.lt.s32.totalorder %s1032_s10, %s1025_s3 }
  0x50   : > { %p1029_p8 = pneg %p1028_p6  ;;  %p1035_p3 = por %p1034_p11, %p1033_p12 }
  0x52   : > { %p1036_p9 = pnand %p1035_p3, %p1029_p8 }
  0x54   : > { %1039 = shalt.err (!%p1036_p9)
}
  0x55   : > { %847 = dma.hbm_to_vmem [thread:$0]  (!%p1281_p2), %s271_s14, 128, %s274_s17, %s1285_s25  }
  0x56   : > { %p1420_p7 = scmp.ne.s32.totalorder %s1406_s28, 0 }
  0x57   : > { %p1421_p13 = scmp.eq.s32.totalorder (!%p1420_p7), %s1200_s24, 0 }
  0x58   : > { %282 = sbr.rel (%p1420_p7) target bundleno = 383 (0x17f), region = 40 }
  0x5d   : > { %1091 = dma.done.wait (%p1421_p13), [#allocation3], 1024   ;;  %p1422_p10 = pmov %p1421_p13 }
  0x5f   : > { %1093 = vsyncadd (%p1422_p10), [#allocation3], 4294966272  ;;  %p1423_p0 = pmov %p1422_p10 }
  0x61   : > { %1095 = dma.done.wait (%p1423_p0), [#allocation6], 1024   ;;  %p1424_p5 = pmov %p1423_p0 }
  0x62   : > { %s292_s3 = sand.u32 1, %s1200_s24   ;;  %s294_s7 = sand.u32 1, %s1112_s19  }
  0x63   : > { %1097 = vsyncadd (%p1424_p5), [#allocation6], 4294966272  ;;  %s1332_s28 = sshll.u32 %s294_s7, 3  ;;  %s293_s30 = scalar_lea.sflag [#allocation3], %s292_s3 }
  0x64   : > { %s296_s8 = scalar_lea.vmem [#allocation7], %s1332_s28  ;;  %p1425_p2 = scmp.ne.s32.totalorder %s1404_s26, 0 }
  0x66   : > { %1099 = dma.done.wait (%p1425_p2), %s293_s30, 256  }
  0x67   : > { %1101 = vsyncadd (%p1425_p2), %s293_s30, 4294967040  ;;  %v1136_v0 = vmov 0.0   ;;  %vm1137_vm0 = vmmov 0   ;;  %v912_v1 = vld [vmem:[#allocation5 + $0x38] sm:$0xff]   ;;  %v914_v3 = vld [vmem:[#allocation5 + $0x30] sm:$0xff]   ;;  %s305_s24 = scalar_lea.vmem [#allocation8], %s1332_s28 }
  0x68   : > { %780 = vmatprep.subr.bf16.mxu0 %v1136_v0  ;;  %800 = vmatprep.subr.bf16.mxu1 %v1136_v0  ;;  %v913_v2 = vld [vmem:[#allocation2 + $0x38] sm:$0xff]   ;;  %v915_v4 = vld [vmem:[#allocation2 + $0x30] sm:$0xff]   ;;  %v916_v5 = vld [vmem:[#allocation5 + $0x28] sm:$0xff]   ;;  %s759_s25 = sshll.u32 %s1120_s21, 7  ;;  %s339_s29 = scalar_lea.vmem [#allocation9], %s1332_s28 }
  0x69   : > { %796 = vmatprep.mubr.msk.bf16.mxu0 %vm1137_vm0, %v1136_v0  ;;  %816 = vmatprep.mubr.msk.bf16.mxu1 %vm1137_vm0, %v1136_v0  ;;  %v917_v6 = vld [vmem:[#allocation2 + $0x28] sm:$0xff]   ;;  %v918_v7 = vld [vmem:[#allocation5 + $0x20] sm:$0xff]   ;;  %v920_v9 = vld [vmem:[#allocation5 + $0x18] sm:$0xff]   ;;  %s589_s12 = sshll.u32 %s339_s29, 4  ;;  %s587_s14 = scalar_lea.hbm %s1392_s5, %s759_s25  ;;  %s590_s12 = int_to_ptr.vmem [resolvable:$true] %s589_s12 }
  0x6a   : > { %781 = vmatpush3.bf16.msra.mxu0 %v912_v1  ;;  %801 = vmatpush3.bf16.msra.mxu1 %v913_v2  ;;  %v919_v8 = vld [vmem:[#allocation2 + $0x20] sm:$0xff]   ;;  %v921_v10 = vld [vmem:[#allocation2 + $0x18] sm:$0xff]   ;;  %v922_v11 = vld [vmem:[#allocation5 + $0x10] sm:$0xff]   ;;  %s575_s11 = scalar_lea.sflag [#allocation4], %s294_s7  ;;  %s1040_s17 = scalar_lea.vmem %s590_s12, 128 }
  0x6b   : > { %782 = vmatprep.subr.bf16.mxu0 %v1136_v0  ;;  %802 = vmatprep.subr.bf16.mxu1 %v1136_v0  ;;  %v923_v12 = vld [vmem:[#allocation2 + $0x10] sm:$0xff]   ;;  %v924_v13 = vld [vmem:[#allocation5 + $0x8] sm:$0xff]   ;;  %v926_v15 = vld [vmem:[#allocation5] sm:$0xff]   ;;  %p1041_p1 = scmp.ne.s32.totalorder %s590_s12, %s1040_s17  ;;  %p1426_p4 = scmp.ne.s32.totalorder %s1412_s15, 0 }
  0x6c   : > { %v925_v14 = vld [vmem:[#allocation2 + $0x8] sm:$0xff]   ;;  %v345_v16 = vld [vmem:[%s305_s24] sm:$0xff]  ;;  %v927_v17 = vld [vmem:[#allocation2] sm:$0xff]   ;;  %s1138_s6 = smov [#allocation9]  }
  0x6d   : > { %v344_v18 = vld [vmem:[%s296_s8] sm:$0xff]  ;;  %v363_v19 = vpack.c.bf16 %v345_v16, %v345_v16  ;;  %p1042_p6 = pnand %p1041_p1, %p1426_p4  ;;  %s1044_s13 = sshll.u32 %s1138_s6, 4  ;;  %s1045_s13 = int_to_ptr.vmem [resolvable:$false] %s1044_s13 }
  0x6e   : > { %783 = vmatpush3.bf16.msra.mxu0 %v914_v3  ;;  %803 = vmatpush3.bf16.msra.mxu1 %v915_v4  ;;  %v346_v20 = vpack.c.bf16 %v344_v18, %v344_v18  ;;  %v756_v23 = vld [vmem:[%s1389_s2] ss:$0 sm:$0xff]  ;;  %v570_v35 = vsub.f32 %v344_v18, %v345_v16  ;;  %s1046_s21 = scalar_lea.vmem %s1045_s13, 256  ;;  %p1047_p12 = scmp.lt.s32.totalorder %s590_s12, %s1045_s13 }
  0x6f   : > { %784 = vmatprep.subr.bf16.mxu0 %v1136_v0  ;;  %804 = vmatprep.subr.bf16.mxu1 %v1136_v0  ;;  %p1043_p8 = pneg %p1042_p6  ;;  %p1048_p11 = scmp.lt.s32.totalorder %s1046_s21, %s1040_s17 }
  0x71   : > { %p1049_p3 = por %p1048_p11, %p1047_p12 }
  0x72   : > { %785 = vmatpush3.bf16.msra.mxu0 %v916_v5  ;;  %805 = vmatpush3.bf16.msra.mxu1 %v917_v6 }
  0x73   : > { %786 = vmatprep.subr.bf16.mxu0 %v1136_v0  ;;  %806 = vmatprep.subr.bf16.mxu1 %v1136_v0  ;;  %p1050_p9 = pnand %p1049_p3, %p1043_p8 }
  0x76   : > { %787 = vmatpush3.bf16.msra.mxu0 %v918_v7  ;;  %807 = vmatpush3.bf16.msra.mxu1 %v919_v8 }
  0x77   : > { %788 = vmatprep.subr.bf16.mxu0 %v1136_v0  ;;  %808 = vmatprep.subr.bf16.mxu1 %v1136_v0 }
  0x7a   : > { %789 = vmatpush3.bf16.msra.mxu0 %v920_v9  ;;  %809 = vmatpush3.bf16.msra.mxu1 %v921_v10 }
  0x7b   : > { %790 = vmatprep.subr.bf16.mxu0 %v1136_v0  ;;  %810 = vmatprep.subr.bf16.mxu1 %v1136_v0 }
  0x7e   : > { %791 = vmatpush3.bf16.msra.mxu0 %v922_v11  ;;  %811 = vmatpush3.bf16.msra.mxu1 %v923_v12 }
  0x7f   : > { %792 = vmatprep.subr.bf16.mxu0 %v1136_v0  ;;  %812 = vmatprep.subr.bf16.mxu1 %v1136_v0 }
  0x82   : > { %793 = vmatpush3.bf16.msra.mxu0 %v924_v13  ;;  %813 = vmatpush3.bf16.msra.mxu1 %v925_v14 }
  0x83   : > { %794 = vmatprep.subr.bf16.mxu0 %v1136_v0  ;;  %814 = vmatprep.subr.bf16.mxu1 %v1136_v0 }
  0x86   : > { %795 = vmatpush3.bf16.msra.mxu0 %v926_v15  ;;  %815 = vmatpush3.bf16.msra.mxu1 %v927_v17 }
  0x89   : > { %797 = vmatmul.mubr.bf16.vlgmr.msra.gmra.mxu0 %v363_v19  ;;  %817 = vmatmul.mubr.bf16.vlgmr.msra.gmra.mxu1 %v346_v20 }
 0x149   : > { %v462_v21 = vpop.f32.mrf.mxu0  ;;  %v550_v22 = vpop.f32.mrf.mxu1 }
 0x14a   : > { %v551_v24 = vadd.f32 %v550_v22, %v462_v21 }
 0x14b   : > { %v798_v25 = vpop.f32.mrf.mxu0  ;;  %v818_v26 = vpop.f32.mrf.mxu1 }
 0x14c   : > { %v563_v27 = vadd.f32 %v756_v23, %v551_v24 }
 0x14d   : > { %v465_v28 = vpop.f32.mrf.mxu0  ;;  %v553_v29 = vpop.f32.mrf.mxu1 }
 0x14e   : > { %v757_v30 = vmul.f32 -1.442695, %v563_v27 }
 0x14f   : > { %v799_v31 = vpop.f32.mrf.mxu0  ;;  %v819_v32 = vpop.f32.mrf.mxu1 }
 0x150   : > { %928 = vpow2.f32 %v757_v30 }
 0x15d   : > { %v929_v33 = vpop.eup %928 }
 0x15e   : > { %v567_v34 = vadd.f32 1.0, %v929_v33 }
 0x160   : > { %930 = vrcp.f32 %v567_v34 }
 0x16d   : > { %v931_v36 = vpop.eup %930 }
 0x16e   : > { %v571_v37 = vmul.f32 %v931_v36, %v570_v35 }
 0x170   : > { %v572_v38 = vadd.f32 %v571_v37, %v345_v16 }
 0x172   : > { %573 = vst [vmem:[%s339_s29] sm:$0xff] %v572_v38 }
 0x173   : > { %1053 = shalt.err (!%p1050_p9)
}
 0x174   : > { %s1054_s10 = scalar_lea.hbm %s587_s14, 128  ;;  %s1058_s28 = scalar_lea.hbm %s1392_s5, 256 }
 0x175   : > { %p1055_p7 = scmp.ne.s32.totalorder %s587_s14, %s1054_s10  ;;  %p1059_p0 = scmp.lt.s32.totalorder %s587_s14, %s1392_s5 }
 0x176   : > { %p1060_p5 = scmp.lt.s32.totalorder %s1058_s28, %s1054_s10 }
 0x177   : > { %p1056_p13 = pnand %p1055_p7, %p1426_p4 }
 0x178   : > { %p1061_p2 = por %p1060_p5, %p1059_p0 }
 0x179   : > { %p1057_p10 = pneg %p1056_p13 }
 0x17b   : > { %p1062_p1 = pnand %p1061_p2, %p1057_p10 }
 0x17d   : > { %1065 = shalt.err (!%p1062_p1)
}
 0x17e   : > { %832 = dma.vmem_to_hbm [thread:$0]  (%p1426_p4), %s590_s12, 128, %s587_s14, %s575_s11  }
 0x17f PF: > { %s601_s24 = sand.u32 1, %s1108_s18   ;;  %p1427_p6 = scmp.ne.s32.totalorder %s1405_s27, 0 }
 0x180   : > { %p1428_p8 = scmp.ge.s32.totalorder %s1128_s23, 2  ;;  %s602_s26 = scalar_lea.sflag [#allocation4], %s601_s24 }
 0x182   : > { %p849_p12 = pnand %p1428_p8, %p1427_p6 }
 0x184   : > { %p850_p11 = pneg %p849_p12 }
 0x186   : > { %1103 = dma.done.wait (%p850_p11), %s602_s26, 128  }
 0x187   : > { %1105 = vsyncadd (%p850_p11), %s602_s26, 4294967168  ;;  %s20_s23 = sadd.s32 1, %s1128_s23   ;;  %s1429_s16 = sld [smem:[#allocation15_spill]] }
 0x188   : > { %p17_p3 = scmp.ge.s32.totalorder %s20_s23, 4   ;;  %s1430_s15 = sld [smem:[#allocation14_spill]] }
 0x189   : > { %s1431_s18 = smov %s1112_s19  ;;  %s1432_s19 = smov %s1116_s20 }
 0x18a   : > { %s1434_s21 = smov %s1124_s22  ;;  %19 = sbr.rel (!%p17_p3) target bundleno = 9 (0x9), region = 108 }
 0x18d   : > { %s1433_s20 = smov %s1429_s16 }
 0x18e   : > { %s1435_s22 = smov %s1430_s15 }
 0x18f   :  { %607 = vsyncpa [#allocation3], 1 }
 0x190   :  { %609 = vsyncpa [#allocation3 + $0x1], 1 }
 0x191   :  { %610 = vsyncpa [#allocation6], 1 }
 0x192   :  { %611 = vsyncpa [#allocation4], 1 }
 0x193   :  { %613 = vsyncpa [#allocation4 + $0x1], 1 }

// kernel: tpu_custom_call.1
= control target key start
LH: loop header
LB: loop body
LE: loop exit
PB: predicated region body
PF: predicated region fallthrough
CT: control target
= control target key end

     0   :  { %s1387_s0 = inlined_call_operand.hbm [shape: bf16[128,128], index: 0, kind: input, shape index: {}]   ;;  %s1388_s1 = inlined_call_operand.hbm [shape: bf16[128,128], index: 1, kind: input, shape index: {}]   ;;  %s1389_s2 = inlined_call_operand.vmem [shape: f32[1,128], index: 2, kind: input, shape index: {}]   ;;  %s1390_s3 = inlined_call_operand.hbm [shape: f32[16,128], index: 3, kind: input, shape index: {}]   ;;  %s1391_s4 = inlined_call_operand.hbm [shape: f32[16,128], index: 4, kind: input, shape index: {}]   ;;  %s1392_s5 = inlined_call_operand.hbm [shape: f32[16,128], index: 5, kind: output, shape index: {}]  }
   0x1   :  { %1402 = sst [smem:[#allocation16_spill]] %s1387_s0 }
   0x2   :  { %1403 = sst [smem:[#allocation17_spill]] %s1390_s3 }
   0x3   :  { %10 = vsyncpa [#allocation3], 0 }
   0x4   :  { %11 = vsyncpa [#allocation6], 0 }
   0x5   :  { %12 = vsyncpa [#allocation4], 0 }
   0x6   :  { %14 = vsyncpa [#allocation4 + $0x1], 0  ;;  %s1169_s18 = smov 0   ;;  %s1171_s19 = smov 0  }
   0x7   :  { %s1173_s20 = smov 0   ;;  %s1175_s21 = smov 0  }
   0x8   :  { %s1177_s22 = smov 0   ;;  %s1179_s23 = smov 0  }
   0x9 LB: > { %s1200_s24 = sadd.s32 4294967295, %s1128_s23   ;;  %s724_s25 = sadd.s32 4294967294, %s1128_s23   ;;  %s1128_s23 = sphi %s1179_s23, %s20_s23   ;;  %s1124_s22 = sphi %s1177_s22, %s1435_s22   ;;  %s1120_s21 = sphi %s1175_s21, %s1434_s21   ;;  %s1116_s20 = sphi %s1173_s20, %s1433_s20   ;;  %s1112_s19 = sphi %s1171_s19, %s1432_s19   ;;  %s1108_s18 = sphi %s1169_s18, %s1431_s18  }
   0xa   : > { %p130_p0 = scmp.ne.s32.totalorder %s1112_s19, %s1108_s18  ;;  %p1396_p1 = scmp.eq.s32.totalorder %s1200_s24, 0 }
   0xb   : > { %p188_p3 = scmp.eq.s32.totalorder %s724_s25, 1  ;;  %p725_p5 = scmp.ge.s32.totalorder %s1128_s23, 1 }
   0xc   : > { %p1209_p4 = por %p1396_p1, %p130_p0  ;;  %p195_p7 = scmp.lt.s32.totalorder %s1128_s23, 3 }
   0xd   : > { %p1214_p6 = por %p188_p3, %p130_p0  ;;  %s1130_s29 = smov [#allocation2]  }
   0xe   : > { %s1404_s26 = scalar_select %p1209_p4, 1, 0 }
   0xf   : > { %s1405_s27 = scalar_select %p1214_p6, 1, 0 }
  0x10   : > { %p1219_p8 = pnand %p725_p5, %p195_p7  ;;  %s209_s30 = sshll.u32 %s1130_s29, 4  ;;  %s210_s30 = int_to_ptr.vmem [resolvable:$true] %s209_s30 }
  0x11   : > { %s32_s7 = sadd.s32 1, %s1124_s22  ;;  %s943_s8 = scalar_lea.vmem %s210_s30, 1024 }
  0x12   : > { %s1406_s28 = scalar_select %p1219_p8, 1, 0 }
  0x13   : > { %p834_p9 = pneg %p1219_p8  ;;  %p944_p13 = scmp.ne.s32.totalorder %s210_s30, %s943_s8 }
  0x14   : > { %p951_p5 = scmp.lt.s32.totalorder %s210_s30, %s210_s30  ;;  %p952_p7 = scmp.lt.s32.totalorder %s943_s8, %s943_s8 }
  0x15   : > { %p1228_p11 = pnand %p834_p9, %p1396_p1 }
  0x16   : > { %p953_p2 = por %p952_p7, %p951_p5 }
  0x17   : > { %p1397_p12 = pneg %p1228_p11 }
  0x19   : > { %p946_p0 = pnand %p944_p13, %p1397_p12 }
  0x1b   : > { %p947_p3 = pneg %p946_p0 }
  0x1d   : > { %p954_p10 = pnand %p953_p2, %p947_p3 }
  0x1f   : > { %957 = shalt.err (!%p954_p10)
}
  0x20   : > { %s1393_s9 = smov 64   ;;  %s1394_s10 = smov 4  }
  0x21   : > { %s1408_s0 = sld [smem:[#allocation16_spill]]  ;;  %p34_p2 = scmp.ge.s32.totalorder %s32_s7, 2 }
  0x22   : > { %s117_s13 = sadd.s32 1, %s1116_s20  ;;  %p124_p9 = scmp.ne.s32.totalorder %s1116_s20, %s1112_s19 }
  0x23   : > { %p125_p10 = scmp.eq.s32.totalorder %s1128_s23, 0  ;;  %s1437_s7 = smov (%p34_p2, %s32_s7), 0 }
  0x24   : > { %1409 = sst [smem:[#allocation14_spill]] %s1437_s7  ;;  %p1411_p0 = scmp.eq.s32.totalorder %s1200_s24, 1 }
  0x25   : > { %p1252_p13 = por %p125_p10, %p124_p9  ;;  %s114_s16 = ssub.s32 %s1124_s22, %s1437_s7 }
  0x26   : > { %p1258_p3 = por %p1411_p0, %p124_p9  ;;  %p854_p5 = scmp.lt.s32.totalorder %s1128_s23, 2 }
  0x27   : > { %837 = dma.hbm_to_vmem [thread:$0]  (!%p1228_p11), %s1408_s0, 1024, %s210_s30, [#allocation3], %s1393_s9, %s1393_s9, %s1394_s10  }
  0x28   : > { %s1412_s15 = scalar_select %p1258_p3, 1, 0 }
  0x29   : > { %p115_p7 = scmp.eq.s32.totalorder %s114_s16, 0  ;;  %s244_s17 = sand.u32 1, %s1128_s23  }
  0x2a   : > { %s246_s25 = sand.u32 1, %s1116_s20   ;;  %s731_s8 = sshll.u32 %s1124_s22, 7 }
  0x2b   : > { %s1268_s29 = scalar_select %p115_p7, %s1116_s20, %s117_s13  }
  0x2c   : > { %s1270_s30 = sshll.u32 %s246_s25, 3  ;;  %s1414_s3 = sld [smem:[#allocation17_spill]] }
  0x2d   : > { %1413 = sst [smem:[#allocation15_spill]] %s1268_s29  ;;  %s248_s10 = scalar_lea.vmem [#allocation7], %s1270_s30 }
  0x2e   : > { %s255_s0 = sshll.u32 %s248_s10, 4  ;;  %p1281_p2 = pnand %p854_p5, %p1252_p13  ;;  %s256_s0 = int_to_ptr.vmem [resolvable:$true] %s255_s0 }
  0x2f   : > { %s1133_s13 = smov [#allocation5]   ;;  %s1285_s25 = scalar_lea.sflag [#allocation3], %s244_s17 }
  0x30   : > { %s224_s16 = sshll.u32 %s1133_s13, 4  ;;  %p1398_p9 = pneg %p1281_p2  ;;  %s225_s16 = int_to_ptr.vmem [resolvable:$true] %s224_s16 }
  0x31   : > { %s971_s29 = scalar_lea.vmem %s256_s0, 128  ;;  %s1134_s10 = smov [#allocation7]  }
  0x32   : > { %s253_s9 = scalar_lea.hbm %s1414_s3, %s731_s8  ;;  %p972_p10 = scmp.ne.s32.totalorder %s256_s0, %s971_s29 }
  0x33   : > { %s976_s14 = sshll.u32 %s1134_s10, 4  ;;  %s977_s14 = int_to_ptr.vmem [resolvable:$false] %s976_s14 }
  0x34   : > { %p974_p0 = pnand %p972_p10, %p1398_p9  ;;  %s978_s11 = scalar_lea.vmem %s977_s14, 256 }
  0x35   : > { %p979_p13 = scmp.lt.s32.totalorder %s256_s0, %s977_s14  ;;  %p980_p5 = scmp.lt.s32.totalorder %s978_s11, %s971_s29 }
  0x36   : > { %p975_p7 = pneg %p974_p0 }
  0x37   : > { %p981_p1 = por %p980_p5, %p979_p13 }
  0x39   : > { %p982_p12 = pnand %p981_p1, %p975_p7 }
  0x3b   : > { %985 = shalt.err (!%p982_p12)
}
  0x3c   : > { %844 = dma.hbm_to_vmem [thread:$0]  (!%p1281_p2), %s253_s9, 128, %s256_s0, %s1285_s25  }
  0x3d   : > { %s997_s17 = scalar_lea.vmem %s225_s16, 1024  ;;  %p1416_p10 = pneg %p1228_p11 }
  0x3e   : > { %p998_p6 = scmp.ne.s32.totalorder %s225_s16, %s997_s17  ;;  %p1005_p3 = scmp.lt.s32.totalorder %s225_s16, %s225_s16 }
  0x3f   : > { %p1006_p4 = scmp.lt.s32.totalorder %s997_s17, %s997_s17 }
  0x40   : > { %p1000_p0 = pnand %p998_p6, %p1416_p10 }
  0x41   : > { %p1007_p8 = por %p1006_p4, %p1005_p3 }
  0x42   : > { %p1001_p9 = pneg %p1000_p0 }
  0x44   : > { %p1008_p5 = pnand %p1007_p8, %p1001_p9 }
  0x46   : > { %1011 = shalt.err (!%p1008_p5)
}
  0x47   : > { %s1417_s29 = smov 4   ;;  %s1418_s12 = smov 64  }
  0x48   : > { %840 = dma.hbm_to_vmem [thread:$0]  (!%p1228_p11), %s1388_s1, 1024, %s225_s16, [#allocation6], %s1418_s12, %s1418_s12, %s1417_s29  }
  0x49   : > { %s271_s14 = scalar_lea.hbm %s1391_s4, %s731_s8  ;;  %s266_s11 = scalar_lea.vmem [#allocation8], %s1270_s30 }
  0x4a   : > { %s273_s17 = sshll.u32 %s266_s11, 4  ;;  %p1419_p4 = pneg %p1281_p2  ;;  %s274_s17 = int_to_ptr.vmem [resolvable:$true] %s273_s17 }
  0x4b   : > { %s1025_s3 = scalar_lea.vmem %s274_s17, 128  ;;  %s1135_s6 = smov [#allocation8]  }
  0x4c   : > { %p1026_p1 = scmp.ne.s32.totalorder %s274_s17, %s1025_s3  ;;  %s1030_s13 = sshll.u32 %s1135_s6, 4  ;;  %s1031_s13 = int_to_ptr.vmem [resolvable:$false] %s1030_s13 }
  0x4d   : > { %s1032_s10 = scalar_lea.vmem %s1031_s13, 256  ;;  %p1033_p12 = scmp.lt.s32.totalorder %s274_s17, %s1031_s13 }
  0x4e   : > { %p1028_p6 = pnand %p1026_p1, %p1419_p4  ;;  %p1034_p11 = scmp.lt.s32.totalorder %s1032_s10, %s1025_s3 }
  0x50   : > { %p1029_p8 = pneg %p1028_p6  ;;  %p1035_p3 = por %p1034_p11, %p1033_p12 }
  0x52   : > { %p1036_p9 = pnand %p1035_p3, %p1029_p8 }
  0x54   : > { %1039 = shalt.err (!%p1036_p9)
}
  0x55   : > { %847 = dma.hbm_to_vmem [thread:$0]  (!%p1281_p2), %s271_s14, 128, %s274_s17, %s1285_s25  }
  0x56   : > { %p1420_p7 = scmp.ne.s32.totalorder %s1406_s28, 0 }
  0x57   : > { %p1421_p13 = scmp.eq.s32.totalorder (!%p1420_p7), %s1200_s24, 0 }
  0x58   : > { %282 = sbr.rel (%p1420_p7) target bundleno = 383 (0x17f), region = 40 }
  0x5d   : > { %1091 = dma.done.wait (%p1421_p13), [#allocation3], 1024   ;;  %p1422_p10 = pmov %p1421_p13 }
  0x5f   : > { %1093 = vsyncadd (%p1422_p10), [#allocation3], 4294966272  ;;  %p1423_p0 = pmov %p1422_p10 }
  0x61   : > { %1095 = dma.done.wait (%p1423_p0), [#allocation6], 1024   ;;  %p1424_p5 = pmov %p1423_p0 }
  0x62   : > { %s292_s3 = sand.u32 1, %s1200_s24   ;;  %s294_s7 = sand.u32 1, %s1112_s19  }
  0x63   : > { %1097 = vsyncadd (%p1424_p5), [#allocation6], 4294966272  ;;  %s1332_s28 = sshll.u32 %s294_s7, 3  ;;  %s293_s30 = scalar_lea.sflag [#allocation3], %s292_s3 }
  0x64   : > { %s296_s8 = scalar_lea.vmem [#allocation7], %s1332_s28  ;;  %p1425_p2 = scmp.ne.s32.totalorder %s1404_s26, 0 }
  0x66   : > { %1099 = dma.done.wait (%p1425_p2), %s293_s30, 256  }
  0x67   : > { %1101 = vsyncadd (%p1425_p2), %s293_s30, 4294967040  ;;  %v1136_v0 = vmov 0.0   ;;  %vm1137_vm0 = vmmov 0   ;;  %v912_v1 = vld [vmem:[#allocation5 + $0x38] sm:$0xff]   ;;  %v914_v3 = vld [vmem:[#allocation5 + $0x30] sm:$0xff]   ;;  %s305_s24 = scalar_lea.vmem [#allocation8], %s1332_s28 }
  0x68   : > { %780 = vmatprep.subr.bf16.mxu0 %v1136_v0  ;;  %800 = vmatprep.subr.bf16.mxu1 %v1136_v0  ;;  %v913_v2 = vld [vmem:[#allocation2 + $0x38] sm:$0xff]   ;;  %v915_v4 = vld [vmem:[#allocation2 + $0x30] sm:$0xff]   ;;  %v916_v5 = vld [vmem:[#allocation5 + $0x28] sm:$0xff]   ;;  %s759_s25 = sshll.u32 %s1120_s21, 7  ;;  %s339_s29 = scalar_lea.vmem [#allocation9], %s1332_s28 }
  0x69   : > { %796 = vmatprep.mubr.msk.bf16.mxu0 %vm1137_vm0, %v1136_v0  ;;  %816 = vmatprep.mubr.msk.bf16.mxu1 %vm1137_vm0, %v1136_v0  ;;  %v917_v6 = vld [vmem:[#allocation2 + $0x28] sm:$0xff]   ;;  %v918_v7 = vld [vmem:[#allocation5 + $0x20] sm:$0xff]   ;;  %v920_v9 = vld [vmem:[#allocation5 + $0x18] sm:$0xff]   ;;  %s589_s12 = sshll.u32 %s339_s29, 4  ;;  %s587_s14 = scalar_lea.hbm %s1392_s5, %s759_s25  ;;  %s590_s12 = int_to_ptr.vmem [resolvable:$true] %s589_s12 }
  0x6a   : > { %781 = vmatpush3.bf16.msra.mxu0 %v912_v1  ;;  %801 = vmatpush3.bf16.msra.mxu1 %v913_v2  ;;  %v919_v8 = vld [vmem:[#allocation2 + $0x20] sm:$0xff]   ;;  %v921_v10 = vld [vmem:[#allocation2 + $0x18] sm:$0xff]   ;;  %v922_v11 = vld [vmem:[#allocation5 + $0x10] sm:$0xff]   ;;  %s575_s11 = scalar_lea.sflag [#allocation4], %s294_s7  ;;  %s1040_s17 = scalar_lea.vmem %s590_s12, 128 }
  0x6b   : > { %782 = vmatprep.subr.bf16.mxu0 %v1136_v0  ;;  %802 = vmatprep.subr.bf16.mxu1 %v1136_v0  ;;  %v923_v12 = vld [vmem:[#allocation2 + $0x10] sm:$0xff]   ;;  %v924_v13 = vld [vmem:[#allocation5 + $0x8] sm:$0xff]   ;;  %v926_v15 = vld [vmem:[#allocation5] sm:$0xff]   ;;  %p1041_p1 = scmp.ne.s32.totalorder %s590_s12, %s1040_s17  ;;  %p1426_p4 = scmp.ne.s32.totalorder %s1412_s15, 0 }
  0x6c   : > { %v925_v14 = vld [vmem:[#allocation2 + $0x8] sm:$0xff]   ;;  %v345_v16 = vld [vmem:[%s305_s24] sm:$0xff]  ;;  %v927_v17 = vld [vmem:[#allocation2] sm:$0xff]   ;;  %s1138_s6 = smov [#allocation9]  }
  0x6d   : > { %v344_v18 = vld [vmem:[%s296_s8] sm:$0xff]  ;;  %v363_v19 = vpack.c.bf16 %v345_v16, %v345_v16  ;;  %p1042_p6 = pnand %p1041_p1, %p1426_p4  ;;  %s1044_s13 = sshll.u32 %s1138_s6, 4  ;;  %s1045_s13 = int_to_ptr.vmem [resolvable:$false] %s1044_s13 }
  0x6e   : > { %783 = vmatpush3.bf16.msra.mxu0 %v914_v3  ;;  %803 = vmatpush3.bf16.msra.mxu1 %v915_v4  ;;  %v346_v20 = vpack.c.bf16 %v344_v18, %v344_v18  ;;  %v756_v23 = vld [vmem:[%s1389_s2] ss:$0 sm:$0xff]  ;;  %v570_v35 = vsub.f32 %v344_v18, %v345_v16  ;;  %s1046_s21 = scalar_lea.vmem %s1045_s13, 256  ;;  %p1047_p12 = scmp.lt.s32.totalorder %s590_s12, %s1045_s13 }
  0x6f   : > { %784 = vmatprep.subr.bf16.mxu0 %v1136_v0  ;;  %804 = vmatprep.subr.bf16.mxu1 %v1136_v0  ;;  %p1043_p8 = pneg %p1042_p6  ;;  %p1048_p11 = scmp.lt.s32.totalorder %s1046_s21, %s1040_s17 }
  0x71   : > { %p1049_p3 = por %p1048_p11, %p1047_p12 }
  0x72   : > { %785 = vmatpush3.bf16.msra.mxu0 %v916_v5  ;;  %805 = vmatpush3.bf16.msra.mxu1 %v917_v6 }
  0x73   : > { %786 = vmatprep.subr.bf16.mxu0 %v1136_v0  ;;  %806 = vmatprep.subr.bf16.mxu1 %v1136_v0  ;;  %p1050_p9 = pnand %p1049_p3, %p1043_p8 }
  0x76   : > { %787 = vmatpush3.bf16.msra.mxu0 %v918_v7  ;;  %807 = vmatpush3.bf16.msra.mxu1 %v919_v8 }
  0x77   : > { %788 = vmatprep.subr.bf16.mxu0 %v1136_v0  ;;  %808 = vmatprep.subr.bf16.mxu1 %v1136_v0 }
  0x7a   : > { %789 = vmatpush3.bf16.msra.mxu0 %v920_v9  ;;  %809 = vmatpush3.bf16.msra.mxu1 %v921_v10 }
  0x7b   : > { %790 = vmatprep.subr.bf16.mxu0 %v1136_v0  ;;  %810 = vmatprep.subr.bf16.mxu1 %v1136_v0 }
  0x7e   : > { %791 = vmatpush3.bf16.msra.mxu0 %v922_v11  ;;  %811 = vmatpush3.bf16.msra.mxu1 %v923_v12 }
  0x7f   : > { %792 = vmatprep.subr.bf16.mxu0 %v1136_v0  ;;  %812 = vmatprep.subr.bf16.mxu1 %v1136_v0 }
  0x82   : > { %793 = vmatpush3.bf16.msra.mxu0 %v924_v13  ;;  %813 = vmatpush3.bf16.msra.mxu1 %v925_v14 }
  0x83   : > { %794 = vmatprep.subr.bf16.mxu0 %v1136_v0  ;;  %814 = vmatprep.subr.bf16.mxu1 %v1136_v0 }
  0x86   : > { %795 = vmatpush3.bf16.msra.mxu0 %v926_v15  ;;  %815 = vmatpush3.bf16.msra.mxu1 %v927_v17 }
  0x89   : > { %797 = vmatmul.mubr.bf16.vlgmr.msra.gmra.mxu0 %v363_v19  ;;  %817 = vmatmul.mubr.bf16.vlgmr.msra.gmra.mxu1 %v346_v20 }
 0x149   : > { %v462_v21 = vpop.f32.mrf.mxu0  ;;  %v550_v22 = vpop.f32.mrf.mxu1 }
 0x14a   : > { %v551_v24 = vadd.f32 %v550_v22, %v462_v21 }
 0x14b   : > { %v798_v25 = vpop.f32.mrf.mxu0  ;;  %v818_v26 = vpop.f32.mrf.mxu1 }
 0x14c   : > { %v563_v27 = vadd.f32 %v756_v23, %v551_v24 }
 0x14d   : > { %v465_v28 = vpop.f32.mrf.mxu0  ;;  %v553_v29 = vpop.f32.mrf.mxu1 }
 0x14e   : > { %v757_v30 = vmul.f32 -1.442695, %v563_v27 }
 0x14f   : > { %v799_v31 = vpop.f32.mrf.mxu0  ;;  %v819_v32 = vpop.f32.mrf.mxu1 }
 0x150   : > { %928 = vpow2.f32 %v757_v30 }
 0x15d   : > { %v929_v33 = vpop.eup %928 }
 0x15e   : > { %v567_v34 = vadd.f32 1.0, %v929_v33 }
 0x160   : > { %930 = vrcp.f32 %v567_v34 }
 0x16d   : > { %v931_v36 = vpop.eup %930 }
 0x16e   : > { %v571_v37 = vmul.f32 %v931_v36, %v570_v35 }
 0x170   : > { %v572_v38 = vadd.f32 %v571_v37, %v345_v16 }
 0x172   : > { %573 = vst [vmem:[%s339_s29] sm:$0xff] %v572_v38 }
 0x173   : > { %1053 = shalt.err (!%p1050_p9)
}
 0x174   : > { %s1054_s10 = scalar_lea.hbm %s587_s14, 128  ;;  %s1058_s28 = scalar_lea.hbm %s1392_s5, 256 }
 0x175   : > { %p1055_p7 = scmp.ne.s32.totalorder %s587_s14, %s1054_s10  ;;  %p1059_p0 = scmp.lt.s32.totalorder %s587_s14, %s1392_s5 }
 0x176   : > { %p1060_p5 = scmp.lt.s32.totalorder %s1058_s28, %s1054_s10 }
 0x177   : > { %p1056_p13 = pnand %p1055_p7, %p1426_p4 }
 0x178   : > { %p1061_p2 = por %p1060_p5, %p1059_p0 }
 0x179   : > { %p1057_p10 = pneg %p1056_p13 }
 0x17b   : > { %p1062_p1 = pnand %p1061_p2, %p1057_p10 }
 0x17d   : > { %1065 = shalt.err (!%p1062_p1)
}
 0x17e   : > { %832 = dma.vmem_to_hbm [thread:$0]  (%p1426_p4), %s590_s12, 128, %s587_s14, %s575_s11  }
 0x17f PF: > { %s601_s24 = sand.u32 1, %s1108_s18   ;;  %p1427_p6 = scmp.ne.s32.totalorder %s1405_s27, 0 }
 0x180   : > { %p1428_p8 = scmp.ge.s32.totalorder %s1128_s23, 2  ;;  %s602_s26 = scalar_lea.sflag [#allocation4], %s601_s24 }
 0x182   : > { %p849_p12 = pnand %p1428_p8, %p1427_p6 }
 0x184   : > { %p850_p11 = pneg %p849_p12 }
 0x186   : > { %1103 = dma.done.wait (%p850_p11), %s602_s26, 128  }
 0x187   : > { %1105 = vsyncadd (%p850_p11), %s602_s26, 4294967168  ;;  %s20_s23 = sadd.s32 1, %s1128_s23   ;;  %s1429_s16 = sld [smem:[#allocation15_spill]] }
 0x188   : > { %p17_p3 = scmp.ge.s32.totalorder %s20_s23, 4   ;;  %s1430_s15 = sld [smem:[#allocation14_spill]] }
 0x189   : > { %s1431_s18 = smov %s1112_s19  ;;  %s1432_s19 = smov %s1116_s20 }
 0x18a   : > { %s1434_s21 = smov %s1124_s22  ;;  %19 = sbr.rel (!%p17_p3) target bundleno = 9 (0x9), region = 108 }
 0x18d   : > { %s1433_s20 = smov %s1429_s16 }
 0x18e   : > { %s1435_s22 = smov %s1430_s15 }
 0x18f   :  { %607 = vsyncpa [#allocation3], 1 }
 0x190   :  { %609 = vsyncpa [#allocation3 + $0x1], 1 }
 0x191   :  { %610 = vsyncpa [#allocation6], 1 }
 0x192   :  { %611 = vsyncpa [#allocation4], 1 }
 0x193   :  { %613 = vsyncpa [#allocation4 + $0x1], 1 }

</bundles_post_ra>
